<compile_context>
chip_gen: v6e
topology: v6e:2x2x1
jax: 0.10.0
libtpu: 0.0.40
codegen_flags: <defaults>
</compile_context>

<pallas_src>
import jax
import jax.numpy as jnp
from jax.experimental import pallas as pl
from jax.experimental.pallas import tpu as pltpu


def _mask_mul_kernel(mask_ref, x_ref, o_ref):
    # mask_ref: (row_tile, 1) keep mask (0 or 1); x_ref/o_ref: (row_tile, hw_tile).
    o_ref[...] = x_ref[...] * mask_ref[...]


def _round_up(n, m):
    return (n + m - 1) // m * m


def _sublane_multiple(dtype):
    # Minimum second-to-last tile dim: 8 for 32-bit, 16 for bf16, 32 for int8/fp8.
    itemsize = jnp.dtype(dtype).itemsize
    return max(8, 8 * (4 // itemsize))


# Per-tile byte budget for the x block. ~4 MiB is at the measured elementwise
# roofline knee; double-buffered in+out ≈ 17 MiB live, fits every generation.
_TILE_BYTES = 4 * 1024 * 1024
_VMEM_LIMIT_BYTES = 48 * 1024 * 1024


def _masked_scale_pallas(keep, xf):
    """out[r, :] = xf[r, :] * keep[r, 0] via a Pallas TPU kernel."""
    rows, hw = xf.shape
    itemsize = jnp.dtype(xf.dtype).itemsize
    sub = _sublane_multiple(xf.dtype)
    bytes_per_row = hw * itemsize

    if min(rows, sub) * bytes_per_row <= _TILE_BYTES:
        # Preferred path: full-width rows, tile only over rows (contiguous DMAs).
        if rows <= sub:
            row_tile = rows  # block dim == full array dim (always legal)
        else:
            max_rt = max(sub, (_TILE_BYTES // bytes_per_row) // sub * sub)
            # Aim for >= 2 grid steps so v7x can use both TensorCores.
            half = _round_up(pl.cdiv(rows, 2), sub)
            row_tile = min(half, max_rt)
        grid = (pl.cdiv(rows, row_tile),)
        in_specs = [
            pl.BlockSpec((row_tile, 1), lambda i: (i, 0)),
            pl.BlockSpec((row_tile, hw), lambda i: (i, 0)),
        ]
        out_spec = pl.BlockSpec((row_tile, hw), lambda i: (i, 0))
        dims = ("parallel",)
    else:
        # Huge HW fallback: 2-D tiling, HW innermost so the mask block index is
        # constant across the inner loop (no redundant mask DMAs).
        row_tile = rows if rows < sub else sub
        max_hw = max(128, (_TILE_BYTES // (row_tile * itemsize)) // 128 * 128)
        hw_tile = min(_round_up(hw, 128), max_hw)
        grid = (pl.cdiv(rows, row_tile), pl.cdiv(hw, hw_tile))
        in_specs = [
            pl.BlockSpec((row_tile, 1), lambda i, j: (i, 0)),
            pl.BlockSpec((row_tile, hw_tile), lambda i, j: (i, j)),
        ]
        out_spec = pl.BlockSpec((row_tile, hw_tile), lambda i, j: (i, j))
        dims = ("parallel", "arbitrary")

    cost = pl.CostEstimate(
        flops=rows * hw,
        transcendentals=0,
        bytes_accessed=(2 * rows * hw + rows) * itemsize,
    )

    return pl.pallas_call(
        _mask_mul_kernel,
        out_shape=jax.ShapeDtypeStruct((rows, hw), xf.dtype),
        grid=grid,
        in_specs=in_specs,
        out_specs=out_spec,
        compiler_params=pltpu.CompilerParams(
            dimension_semantics=dims,
            vmem_limit_bytes=_VMEM_LIMIT_BYTES,
        ),
        cost_estimate=cost,
    )(keep, xf)


def random_dropout(x, p=0.5, training=True, *, key, xla_fallback_bytes=0):
    """JAX/Pallas equivalent of RandomDropout.forward (NCHW input).

    xla_fallback_bytes: if the flattened input is smaller than this, skip the
    Pallas call and let XLA fuse the multiply (per-call overhead dominates at
    tiny sizes).  Default 0 keeps the Pallas path always on.
    """
    if not training:
        return x

    k_theta, k_mask = jax.random.split(key)
    # theta ~ Uniform(0, p), matching torch.Tensor(1).uniform_(0, p)
    theta = jax.random.uniform(k_theta, (), jnp.float32, minval=0.0, maxval=p)

    B, C, H, W = x.shape
    HW = H * W
    rows = B * C

    # Per-(batch, channel) keep decision: drop whole feature map w.p. theta, no scaling.
    keep = (jax.random.uniform(k_mask, (rows, 1), jnp.float32) >= theta).astype(x.dtype)

    xf = x.reshape(rows, HW)

    if rows * HW * jnp.dtype(x.dtype).itemsize < xla_fallback_bytes:
        out = xf * keep  # tiny-input fast path: plain XLA fusion
    else:
        out = _masked_scale_pallas(keep, xf)

    return out.reshape(B, C, H, W)


def _check_invariants(x, out):
    B, C = x.shape[0], x.shape[1]
    same = jnp.all(out.reshape(B, C, -1) == x.reshape(B, C, -1), axis=-1)
    zero = jnp.all(out.reshape(B, C, -1) == 0.0, axis=-1)
    assert bool(jnp.all(same | zero)), "feature dropout invariant violated"
    assert out.shape == x.shape and out.dtype == x.dtype


if __name__ == "__main__":
    key = jax.random.PRNGKey(0)
    k_x, k_drop, k_x2, k_drop2, k_x3, k_drop3 = jax.random.split(key, 6)

    # Primary small test case (aligned, f32).
    B, C, H, W = 2, 4, 16, 16
    x = jax.random.normal(k_x, (B, C, H, W), dtype=jnp.float32)
    out = random_dropout(x, p=0.5, training=True, key=k_drop)
    out = jax.block_until_ready(out)

    # Eval mode is identity.
    out_eval = random_dropout(x, p=0.5, training=False, key=k_drop)
    assert bool(jnp.all(out_eval == x))
    _check_invariants(x, out)

    # Ragged shape (rows % 8 != 0, HW % 128 != 0): exercises edge-block handling
    # without any jnp.pad / output slice.
    x2 = jax.random.normal(k_x2, (4, 5, 5, 10), dtype=jnp.float32)
    out2 = jax.block_until_ready(random_dropout(x2, p=0.5, training=True, key=k_drop2))
    _check_invariants(x2, out2)

    # bf16 path: exercises dtype-aware sublane rounding.
    x3 = jax.random.normal(k_x3, (2, 5, 9, 13), dtype=jnp.bfloat16)
    out3 = jax.block_until_ready(random_dropout(x3, p=0.5, training=True, key=k_drop))
    _check_invariants(x3, out3)

    print("KERNEL_OK")
</pallas_src>

<mosaic_0001>
module attributes {stable_mosaic.version = 11 : i64} {
  func.func @_mask_mul_kernel(%arg0: i32, %arg1: memref<8x1xf32, #tpu.memory_space<vmem>>, %arg2: memref<8x256xf32, #tpu.memory_space<vmem>>, %arg3: memref<8x256xf32, #tpu.memory_space<vmem>>) attributes {dimension_semantics = [#tpu.dimension_semantics<parallel>], iteration_bounds = array<i64: 1>, scalar_prefetch = 0 : i64, scratch_operands = 0 : i64, tpu.core_type = #tpu.core_type<tc>, window_params = [{transform_indices = @transform_0, window_bounds = array<i64: 8, 1>}, {transform_indices = @transform_1, window_bounds = array<i64: 8, 256>}, {transform_indices = @transform_2, window_bounds = array<i64: 8, 256>}]} {
    %c0 = arith.constant 0 : index
    %c0_0 = arith.constant 0 : index
    %0 = vector.load %arg2[%c0, %c0_0] : memref<8x256xf32, #tpu.memory_space<vmem>>, vector<8x256xf32>
    %c0_1 = arith.constant 0 : index
    %c0_2 = arith.constant 0 : index
    %1 = vector.load %arg1[%c0_1, %c0_2] : memref<8x1xf32, #tpu.memory_space<vmem>>, vector<8x1xf32>
    %2 = vector.broadcast %1 : vector<8x1xf32> to vector<8x256xf32>
    %3 = arith.mulf %0, %2 : vector<8x256xf32>
    %c0_3 = arith.constant 0 : index
    %c0_4 = arith.constant 0 : index
    %4 = vector.load %arg3[%c0_3, %c0_4] : memref<8x256xf32, #tpu.memory_space<vmem>>, vector<8x256xf32>
    tpu.vector_store %arg3[%c0_3, %c0_4], %3 {strides = array<i32>} : memref<8x256xf32, #tpu.memory_space<vmem>>, vector<8x256xf32>,
    return
  }
  func.func @transform_0(%arg0: i32) -> (i32, i32) {
    %c0_i32 = arith.constant 0 : i32
    %c0_i32_0 = arith.constant 0 : i32
    return %arg0, %c0_i32 : i32, i32
  }
  func.func @transform_1(%arg0: i32) -> (i32, i32) {
    %c0_i32 = arith.constant 0 : i32
    %c0_i32_0 = arith.constant 0 : i32
    return %arg0, %c0_i32 : i32, i32
  }
  func.func @transform_2(%arg0: i32) -> (i32, i32) {
    %c0_i32 = arith.constant 0 : i32
    %c0_i32_0 = arith.constant 0 : i32
    return %arg0, %c0_i32 : i32, i32
  }
}

</mosaic_0001>

<bundles_post_ra>
// kernel: tpu_custom_call.1
= control target key start
LH: loop header
LB: loop body
LE: loop exit
PB: predicated region body
PF: predicated region fallthrough
CT: control target
= control target key end

     0   :  { %7 = vsyncpa [#allocation3], 0  ;;  %s126_s0 = inlined_call_operand.vmem [shape: f32[8,1], index: 0, kind: input, shape index: {}]   ;;  %s127_s1 = inlined_call_operand.hbm [shape: f32[8,256], index: 1, kind: input, shape index: {}]   ;;  %s128_s2 = inlined_call_operand.hbm [shape: f32[8,256], index: 2, kind: output, shape index: {}]  }
   0x1   :  { %8 = vsyncpa [#allocation4], 0  ;;  %s99_s9 = smov [#allocation2]  }
   0x2   :  { %s17_s10 = sshll.u32 %s99_s9, 4  ;;  %s18_s10 = int_to_ptr.vmem [resolvable:$true] %s17_s10 }
   0x3   :  { %s63_s11 = scalar_lea.vmem %s18_s10, 256  ;;  %p68_p1 = scmp.lt.s32.totalorder %s18_s10, %s18_s10 }
   0x4   :  { %p64_p0 = scmp.ne.s32.totalorder %s18_s10, %s63_s11  ;;  %p69_p2 = scmp.lt.s32.totalorder %s63_s11, %s63_s11 }
   0x6   :  { %p70_p3 = por %p69_p2, %p68_p1 }
   0x8   :  { %p71_p4 = pnand %p70_p3, %p64_p0 }
   0xa   :  { %74 = shalt.err (!%p71_p4)
}
   0xb   :  { %20 = dma.hbm_to_vmem [thread:$0]  %s127_s1, 256, %s18_s10, [#allocation3]  }
   0xc   :  { %95 = dma.done.wait [#allocation3], 256  }
   0xd   :  { %96 = vsyncadd [#allocation3], 4294967040  ;;  %v100_v0 = vmov 0   ;;  %v26_v1 = vld [vmem:[%s126_s0] sm:$0xff]  ;;  %v25_v3 = vld [vmem:[#allocation2 + $0x8] sm:$0xff]  ;;  %s101_s16 = smov [#allocation5]  }
   0xe   :  { %54 = vset.pattern.permute.xlu0 %v100_v0  ;;  %v24_v2 = vld [vmem:[#allocation2] sm:$0xff]  ;;  %s42_s17 = sshll.u32 %s101_s16, 4  ;;  %s43_s17 = int_to_ptr.vmem [resolvable:$true] %s42_s17 }
   0xf   :  { %29 = vperm.xlu0 %54, %v26_v1   ;;  %s75_s1 = scalar_lea.vmem %s43_s17, 256  ;;  %p80_p6 = scmp.lt.s32.totalorder %s43_s17, %s43_s17 }
  0x10   :  { %p76_p5 = scmp.ne.s32.totalorder %s43_s17, %s75_s1  ;;  %p81_p7 = scmp.lt.s32.totalorder %s75_s1, %s75_s1 }
  0x12   :  { %p82_p8 = por %p81_p7, %p80_p6 }
  0x14   :  { %p83_p9 = pnand %p82_p8, %p76_p5 }
  0x8a   :  { %v30_v4 = vpop.permute.xlu0 %29 }
  0x8b   :  { %v32_v5 = vmul.f32 %v30_v4, %v24_v2  ;;  %v33_v6 = vmul.f32 %v30_v4, %v25_v3 }
  0x8d   :  { %34 = vst [vmem:[#allocation5] sm:$0xff] %v32_v5  ;;  %35 = vst [vmem:[#allocation5 + $0x8] sm:$0xff] %v33_v6 }
  0x8e   :  { %86 = shalt.err (!%p83_p9)
}
  0x8f   :  { %45 = dma.vmem_to_hbm [thread:$0]  %s43_s17, 256, %s128_s2, [#allocation4]  }
  0x90   :  { %97 = dma.done.wait [#allocation4], 256  }
  0x91   :  { %98 = vsyncadd [#allocation4], 4294967040 }
  0x92   :  { %49 = vsyncpa [#allocation3], 1 }
  0x93   :  { %50 = vsyncpa [#allocation4], 1 }

</bundles_post_ra>
